<compile_context>
chip_gen: v5e
topology: v5e:2x2
jax: 0.10.0
libtpu: 0.0.40
codegen_flags: <defaults>
</compile_context>

<pallas_src>
import functools
import math

import numpy as np

import jax
import jax.numpy as jnp
from jax import lax
from jax.experimental import pallas as pl
from jax.experimental.pallas import tpu as pltpu

_EPS = 1e-5


# --------------------------------------------------------------------------
# Fused kernel: [convEvenChannel . conv1x1] + MaxPool + DoubleConv + MaxUnpool
#               + convOriginChannel, one lane tile (many batch rows) per step.
# --------------------------------------------------------------------------
def _pe_kernel(xt_ref, wf_ref, b2_ref, wo_ref, bo_ref, hc_ref,
               k1s_ref, c1_ref, k2s_ref, c2_ref, o_ref, *, Ce):
    f32 = jnp.float32
    E = wf_ref.shape[0]                     # padded even-channel count
    L = xt_ref.shape[1]                     # lanes = (batch-in-tile) * H

    # grid-invariant lane (h) masks: 0 = h even, 1 = (h+2 < H), 2 = (h >= 2)
    hsel = hc_ref[0:1, :]                   # (1, L)
    hp2 = hc_ref[1:2, :]
    hm2 = hc_ref[2:3, :]

    # tiny sublane (even-channel index e) masks
    e_idx = lax.broadcasted_iota(jnp.int32, (E, 1), 0)
    esel = (e_idx % 2 == 0).astype(f32)     # (E, 1)
    ep2 = (e_idx + 2 < Ce).astype(f32)
    em2 = (e_idx >= 2).astype(f32)

    # (1)+(2) fused convEvenChannel . conv1x1 -> transposed, batch-packed
    #         image x2t[e, l] with l = (batch-in-tile)*H + h.  One MXU matmul.
    x2t = jnp.dot(wf_ref[...], xt_ref[...].astype(f32),
                  preferred_element_type=f32) + b2_ref[...]        # (E, L)

    # XLU shifts (wrap-around; callers mask out-of-range taps)
    def sh(v, d):       # out[., l] = v[., l + d]
        return pltpu.roll(v, (-d) % L, axis=1)

    def se(v, d):       # out[e, .] = v[e + d, .]
        return pltpu.roll(v, (-d) % E, axis=0)

    one = f32(1.0)

    def swap_h(v):      # 2x2-window partner along h (h XOR 1); always valid
        return hsel * sh(v, 1) + (one - hsel) * sh(v, -1)

    def swap_e(v):      # 2x2-window partner along e (e XOR 1); always valid
        return esel * se(v, 1) + (one - esel) * se(v, -1)

    # (3) MaxPool2d(2): window max + first-max one-hot, full resolution
    ph = jnp.maximum(x2t, swap_h(x2t))
    mx = jnp.maximum(ph, swap_e(ph))              # window max, replicated 2x2

    key = 2.0 * (one - hsel) + (one - esel)       # PyTorch row-major scan key
    eq = x2t == mx
    keyq = jnp.where(eq, key, f32(4.0))
    kh = jnp.minimum(keyq, swap_h(keyq))
    kmin = jnp.minimum(kh, swap_e(kh))
    onehot = eq & (key == kmin)                   # argmax position per window

    # (4) DoubleConv(1, 1, 3) of the pooled image at full resolution:
    #     3x3 pad=1 conv on the pooled image == dilation-2 conv on the
    #     replicated window-max image.  Shifts = rolls + boundary masks.
    hmask = {-2: hm2, 0: None, 2: hp2}
    emask = {-2: em2, 0: None, 2: ep2}
    offs = (-2, 0, 2)

    def shift2d(v, dh, de):
        t = v if dh == 0 else sh(v, dh)
        if hmask[dh] is not None:
            t = t * hmask[dh]
        u = t if de == 0 else se(t, de)
        if emask[de] is not None:
            u = u * emask[de]
        return u

    # conv1 (1 -> 3 mids), BN(eval) folded into the weights, ReLU
    t_mx = {(dh, de): shift2d(mx, dh, de) for dh in offs for de in offs}
    h1 = []
    for m in range(3):
        acc = None
        for ia, dh in enumerate(offs):
            for ib, de in enumerate(offs):
                term = k1s_ref[m * 9 + ia * 3 + ib] * t_mx[(dh, de)]
                acc = term if acc is None else acc + term
        h1.append(jnp.maximum(acc + c1_ref[m], 0.0))

    # conv2 (3 -> 1): shifts commute with the per-mid scaling, so pre-combine
    # the three mid channels per tap and shift each combined image only once.
    acc2 = None
    for ia, dh in enumerate(offs):
        for ib, de in enumerate(offs):
            g = None
            for m in range(3):
                term = k2s_ref[m * 9 + ia * 3 + ib] * h1[m]
                g = term if g is None else g + term
            u = shift2d(g, dh, de)
            acc2 = u if acc2 is None else acc2 + u
    y4 = jnp.maximum(acc2 + c2_ref[0], 0.0)       # (E, L), replicated 2x2

    # (5) MaxUnpool2d(2) + (6) convOriginChannel -> lane-dense (C, L) store
    x5t = jnp.where(onehot, y4, 0.0)
    o_ref[...] = jnp.dot(wo_ref[...], x5t,
                         preferred_element_type=f32) + bo_ref[...]


# --------------------------------------------------------------------------
# Wrapper (jax.jit friendly: all parameter glue stays traced jnp)
# --------------------------------------------------------------------------
def _lane_tiling(B, H, CW):
    """Lanes per grid step (whole H-segments, multiple of 128) + padded total."""
    BH = B * H
    if BH % 128 == 0:
        base = 128 // math.gcd(128, H)       # smallest TB with TB*H % 128 == 0
        tb = base
        while tb < B and B % tb != 0:
            tb += base
        if tb <= B and B % tb == 0:
            # Grow the tile under a small VMEM budget; keep >= 2 grid steps
            # when possible so both v7x TensorCores get work.
            while (B % (tb * 2) == 0 and B // (tb * 2) >= 2
                   and CW * (tb * 2) * H * 4 <= (2 << 20)):
                tb *= 2
            return tb * H, BH
    # fallback (tiny / awkward batches): one lane-padded tile of >= 128 lanes
    Lp = ((BH + 127) // 128) * 128
    return Lp, Lp


def positional_encoding(x, p):
    B, C, H, W = x.shape
    if H % 2:
        raise ValueError("PositionalEncoding kernel requires even H.")
    Ce = C + C % 2
    E = -(-Ce // 8) * 8                      # Ce padded to a multiple of 8
    CW = C * W
    f32 = jnp.float32

    # ---- fold the two leading 1x1 convs into one (E, C*W) weight ----------
    we = p["we"].astype(f32)
    w1 = p["w1"].astype(f32)
    wf = (we[:, :, None] * w1[None, None, :]).reshape(Ce, CW)
    wf = jnp.pad(wf, ((0, E - Ce), (0, 0)))
    b2 = jnp.pad(p["be"].astype(f32) * jnp.sum(w1) + p["b1"].astype(f32),
                 (0, E - Ce)).reshape(E, 1)
    wo = jnp.pad(p["wo"].astype(f32), ((0, 0), (0, E - Ce)))          # (C, E)
    bo = p["bo"].astype(f32).reshape(C, 1)

    # ---- DoubleConv / BN(eval) folded, passed as small SMEM arrays --------
    s1 = p["g1"].astype(f32) / jnp.sqrt(p["v1"].astype(f32) + _EPS)
    k1s = (p["k1"].astype(f32) * s1[:, None, None]).reshape(-1)       # (27,)
    c1 = p["beta1"].astype(f32) - p["mu1"].astype(f32) * s1           # (3,)
    s2 = p["g2"].astype(f32) / jnp.sqrt(p["v2"].astype(f32) + _EPS)
    k2s = (p["k2"].astype(f32) * s2).reshape(-1)                      # (27,)
    c2 = (p["beta2"].astype(f32) - p["mu2"].astype(f32) * s2).reshape(1)

    # ---- lane packing: batch*height in the lane axis, whole H-segments ----
    BH = B * H
    L, Lp = _lane_tiling(B, H, CW)
    xt = jnp.transpose(x, (1, 3, 0, 2)).reshape(CW, BH)   # [c*W+w, b*H+h]
    if Lp > BH:
        xt = jnp.pad(xt, ((0, 0), (0, Lp - BH)))

    # grid-invariant lane (h) masks, blocked exactly like xt / the output
    lane = jnp.arange(Lp)
    h_in = lane % H
    valid = lane < BH
    hc = jnp.stack([
        ((h_in % 2) == 0) & valid,        # h even (2x2-window parity select)
        ((h_in + 2) < H) & valid,         # +2 dilated tap in range
        (h_in >= 2) & valid,              # -2 dilated tap in range
    ] + [jnp.zeros_like(valid)] * 5).astype(f32)           # (8, Lp)

    ntiles = Lp // L
    kernel = functools.partial(_pe_kernel, Ce=Ce)
    smem = pl.BlockSpec(memory_space=pltpu.MemorySpace.SMEM)

    y = pl.pallas_call(
        kernel,
        out_shape=jax.ShapeDtypeStruct((C, Lp), f32),
        grid=(ntiles,),
        in_specs=[
            pl.BlockSpec((CW, L), lambda b: (0, b)),      # x, pre-transposed
            pl.BlockSpec((E, CW), lambda b: (0, 0)),      # fused 1x1 weight
            pl.BlockSpec((E, 1), lambda b: (0, 0)),       # fused 1x1 bias
            pl.BlockSpec((C, E), lambda b: (0, 0)),       # convOriginChannel W
            pl.BlockSpec((C, 1), lambda b: (0, 0)),       # convOriginChannel b
            pl.BlockSpec((8, L), lambda b: (0, b)),       # lane (h) masks
            smem, smem, smem, smem,                       # DoubleConv consts
        ],
        out_specs=pl.BlockSpec((C, L), lambda b: (0, b)),
        compiler_params=pltpu.CompilerParams(
            dimension_semantics=("parallel",)),
    )(xt, wf, b2, wo, bo, hc, k1s, c1, k2s, c2)

    # wrapper-side layout plumbing back to the PyTorch NCHW(+1) output
    return y[:, :BH].reshape(C, B, H).transpose(1, 0, 2)[..., None]


# --------------------------------------------------------------------------
# Pure-JAX reference (correctness check only)
# --------------------------------------------------------------------------
def reference(x, p):
    B, C, H, W = x.shape
    Ce = C + C % 2
    Hp, Wp = H // 2, Ce // 2

    xe = jnp.einsum('bchw,ec->behw', x, p["we"]) + p["be"][None, :, None, None]
    x1 = jnp.transpose(xe, (0, 3, 2, 1))                         # (B,W,H,Ce)
    x2 = jnp.einsum('bwhe,w->bhe', x1, p["w1"]) + p["b1"]        # (B,H,Ce)

    win = x2.reshape(B, Hp, 2, Wp, 2).transpose(0, 1, 3, 2, 4).reshape(B, Hp, Wp, 4)
    mx = win.max(-1)
    eq = win == mx[..., None]
    onehot = eq & (jnp.cumsum(eq, axis=-1) == 1)

    dn = ('NCHW', 'OIHW', 'NCHW')
    h = mx[:, None]
    h1 = lax.conv_general_dilated(h, p["k1"].reshape(3, 1, 3, 3), (1, 1),
                                  'SAME', dimension_numbers=dn)
    s1 = p["g1"] / jnp.sqrt(p["v1"] + _EPS)
    h1 = (h1 - p["mu1"][None, :, None, None]) * s1[None, :, None, None] \
        + p["beta1"][None, :, None, None]
    h1 = jnp.maximum(h1, 0.0)
    h2 = lax.conv_general_dilated(h1, p["k2"].reshape(1, 3, 3, 3), (1, 1),
                                  'SAME', dimension_numbers=dn)
    s2 = p["g2"] / jnp.sqrt(p["v2"] + _EPS)
    h2 = (h2 - p["mu2"]) * s2 + p["beta2"]
    y4 = jnp.maximum(h2, 0.0)[:, 0]                              # (B,Hp,Wp)

    outw = jnp.where(onehot, y4[..., None], 0.0)
    x5 = outw.reshape(B, Hp, Wp, 2, 2).transpose(0, 1, 3, 2, 4).reshape(B, H, Ce)
    y = jnp.einsum('bhe,ce->bhc', x5, p["wo"]) + p["bo"]
    return jnp.transpose(y, (0, 2, 1))[..., None]


# --------------------------------------------------------------------------
# Deterministic synthetic parameters
# --------------------------------------------------------------------------
def init_params(key, C, H, W):
    Ce = C + C % 2
    ks = jax.random.split(key, 12)
    f32 = jnp.float32
    p = {
        "we": 0.3 * jax.random.normal(ks[0], (Ce, C), f32),      # convEvenChannel
        "be": 0.1 * jax.random.normal(ks[1], (Ce,), f32),
        "w1": 0.3 * jax.random.normal(ks[2], (W,), f32),         # conv1x1 (W -> 1)
        "b1": 0.1 * jax.random.normal(ks[3], (), f32),
        "k1": 0.3 * jax.random.normal(ks[4], (3, 3, 3), f32),    # DoubleConv conv1 (1->3)
        "k2": 0.3 * jax.random.normal(ks[5], (3, 3, 3), f32),    # DoubleConv conv2 (3->1)
        "g1": 1.0 + 0.1 * jax.random.normal(ks[6], (3,), f32),   # BN1 (eval)
        "beta1": 0.1 * jax.random.normal(ks[7], (3,), f32),
        "mu1": 0.1 * jax.random.normal(ks[8], (3,), f32),
        "v1": 1.0 + 0.1 * jnp.abs(jax.random.normal(ks[9], (3,), f32)),
        "g2": jnp.float32(1.05),                                 # BN2 (eval)
        "beta2": jnp.float32(0.02),
        "mu2": jnp.float32(0.01),
        "v2": jnp.float32(1.1),
        "wo": 0.3 * jax.random.normal(ks[10], (C, Ce), f32),     # convOriginChannel
        "bo": 0.1 * jax.random.normal(ks[11], (C,), f32),
    }
    return p


if __name__ == "__main__":
    key = jax.random.PRNGKey(0)
    kx, kp = jax.random.split(key)

    B, C, H, W = 2, 4, 16, 16
    x = jax.random.normal(kx, (B, C, H, W), jnp.float32)
    params = init_params(kp, C, H, W)

    out = jax.jit(positional_encoding)(x, params)
    out = jax.block_until_ready(out)

    ref = reference(x, params)
    assert out.shape == (B, C, H, 1), out.shape
    np.testing.assert_allclose(np.asarray(out), np.asarray(ref),
                               rtol=1e-4, atol=1e-4)
    print("KERNEL_OK")
</pallas_src>

<mosaic_0001>
module attributes {stable_mosaic.version = 11 : i64} {
  func.func @_pe_kernel(%arg0: i32, %arg1: memref<64x128xf32, #tpu.memory_space<vmem>>, %arg2: memref<8x64xf32, #tpu.memory_space<vmem>>, %arg3: memref<8x1xf32, #tpu.memory_space<vmem>>, %arg4: memref<4x8xf32, #tpu.memory_space<vmem>>, %arg5: memref<4x1xf32, #tpu.memory_space<vmem>>, %arg6: memref<8x128xf32, #tpu.memory_space<vmem>>, %arg7: memref<27xf32, #tpu.memory_space<smem>>, %arg8: memref<3xf32, #tpu.memory_space<smem>>, %arg9: memref<27xf32, #tpu.memory_space<smem>>, %arg10: memref<1xf32, #tpu.memory_space<smem>>, %arg11: memref<4x128xf32, #tpu.memory_space<vmem>>) attributes {dimension_semantics = [#tpu.dimension_semantics<parallel>], iteration_bounds = array<i64: 1>, scalar_prefetch = 0 : i64, scratch_operands = 0 : i64, tpu.core_type = #tpu.core_type<tc>, window_params = [{transform_indices = @transform_0, window_bounds = array<i64: 64, 128>}, {pipeline_mode = #tpu.pipeline_mode<synchronous>, transform_indices = @transform_1, window_bounds = array<i64: 8, 64>}, {pipeline_mode = #tpu.pipeline_mode<synchronous>, transform_indices = @transform_2, window_bounds = array<i64: 8, 1>}, {pipeline_mode = #tpu.pipeline_mode<synchronous>, transform_indices = @transform_3, window_bounds = array<i64: 4, 8>}, {pipeline_mode = #tpu.pipeline_mode<synchronous>, transform_indices = @transform_4, window_bounds = array<i64: 4, 1>}, {transform_indices = @transform_5, window_bounds = array<i64: 8, 128>}, {transform_indices = @transform_6, window_bounds = array<i64: 27>}, {transform_indices = @transform_7, window_bounds = array<i64: 3>}, {transform_indices = @transform_8, window_bounds = array<i64: 27>}, {transform_indices = @transform_9, window_bounds = array<i64: 1>}, {transform_indices = @transform_10, window_bounds = array<i64: 4, 128>}]} {
    %c0 = arith.constant 0 : index
    %c0_0 = arith.constant 0 : index
    %0 = vector.load %arg6[%c0, %c0_0] : memref<8x128xf32, #tpu.memory_space<vmem>>, vector<1x128xf32>
    %c1 = arith.constant 1 : index
    %c0_1 = arith.constant 0 : index
    %1 = vector.load %arg6[%c1, %c0_1] : memref<8x128xf32, #tpu.memory_space<vmem>>, vector<1x128xf32>
    %c2 = arith.constant 2 : index
    %c0_2 = arith.constant 0 : index
    %2 = vector.load %arg6[%c2, %c0_2] : memref<8x128xf32, #tpu.memory_space<vmem>>, vector<1x128xf32>
    %3 = tpu.iota {dimensions = array<i32: 0>} : vector<8x1xi32>
    %c2_i32 = arith.constant 2 : i32
    %c0_i32 = arith.constant 0 : i32
    %4 = arith.cmpi eq, %c2_i32, %c0_i32 : i32
    %c1_i32 = arith.constant 1 : i32
    %5 = arith.select %4, %c1_i32, %c2_i32 : i32
    %6 = vector.broadcast %5 : i32 to vector<8x1xi32>
    %7 = arith.remsi %3, %6 : vector<8x1xi32>
    %c0_i32_3 = arith.constant 0 : i32
    %8 = vector.broadcast %c0_i32_3 : i32 to vector<8x1xi32>
    %9 = arith.cmpi ne, %7, %8 : vector<8x1xi32>
    %c0_i32_4 = arith.constant 0 : i32
    %10 = vector.broadcast %c0_i32_4 : i32 to vector<8x1xi32>
    %11 = arith.cmpi slt, %7, %10 : vector<8x1xi32>
    %c0_i32_5 = arith.constant 0 : i32
    %12 = arith.cmpi slt, %5, %c0_i32_5 : i32
    %13 = vector.broadcast %12 : i1 to vector<8x1xi1>
    %14 = vector.broadcast %13 : vector<8x1xi1> to vector<8x1xi1>
    %15 = arith.xori %11, %14 : vector<8x1xi1>
    %16 = arith.andi %15, %9 : vector<8x1xi1>
    %17 = vector.broadcast %5 : i32 to vector<8x1xi32>
    %18 = arith.addi %7, %17 : vector<8x1xi32>
    %19 = arith.select %16, %18, %7 : vector<8x1xi1>, vector<8x1xi32>
    %c0_i32_6 = arith.constant 0 : i32
    %20 = vector.broadcast %c0_i32_6 : i32 to vector<8x1xi32>
    %21 = arith.cmpi eq, %19, %20 : vector<8x1xi32>
    %22 = arith.extui %21 : vector<8x1xi1> to vector<8x1xi32>
    %23 = arith.sitofp %22 : vector<8x1xi32> to vector<8x1xf32>
    %c2_i32_7 = arith.constant 2 : i32
    %24 = vector.broadcast %c2_i32_7 : i32 to vector<8x1xi32>
    %25 = arith.addi %3, %24 : vector<8x1xi32>
    %c4_i32 = arith.constant 4 : i32
    %26 = vector.broadcast %c4_i32 : i32 to vector<8x1xi32>
    %27 = arith.cmpi slt, %25, %26 : vector<8x1xi32>
    %28 = arith.extui %27 : vector<8x1xi1> to vector<8x1xi32>
    %29 = arith.sitofp %28 : vector<8x1xi32> to vector<8x1xf32>
    %c2_i32_8 = arith.constant 2 : i32
    %30 = vector.broadcast %c2_i32_8 : i32 to vector<8x1xi32>
    %31 = arith.cmpi sge, %3, %30 : vector<8x1xi32>
    %32 = arith.extui %31 : vector<8x1xi1> to vector<8x1xi32>
    %33 = arith.sitofp %32 : vector<8x1xi32> to vector<8x1xf32>
    %c0_9 = arith.constant 0 : index
    %c0_10 = arith.constant 0 : index
    %34 = vector.load %arg2[%c0_9, %c0_10] : memref<8x64xf32, #tpu.memory_space<vmem>>, vector<8x64xf32>
    %c0_11 = arith.constant 0 : index
    %c0_12 = arith.constant 0 : index
    %35 = vector.load %arg1[%c0_11, %c0_12] : memref<64x128xf32, #tpu.memory_space<vmem>>, vector<64x128xf32>
    %cst = arith.constant dense<0.000000e+00> : vector<8x128xf32>
    %36 = tpu.matmul %34, %35, %cst {dimension_numbers = #tpu.dot_dimension_numbers<[1], [0], [0], [1], [0, 0, 1, 1], [], []>} : vector<8x64xf32>, vector<64x128xf32>, vector<8x128xf32> -> vector<8x128xf32>
    %c0_13 = arith.constant 0 : index
    %c0_14 = arith.constant 0 : index
    %37 = vector.load %arg3[%c0_13, %c0_14] : memref<8x1xf32, #tpu.memory_space<vmem>>, vector<8x1xf32>
    %38 = vector.broadcast %37 : vector<8x1xf32> to vector<8x128xf32>
    %39 = arith.addf %36, %38 : vector<8x128xf32>
    %c127_i32 = arith.constant 127 : i32
    %40 = tpu.dynamic_rotate %39 by %c127_i32 dim 1 : vector<8x128xf32>, i32 -> vector<8x128xf32>
    %41 = vector.broadcast %0 : vector<1x128xf32> to vector<8x128xf32>
    %42 = arith.mulf %41, %40 : vector<8x128xf32>
    %cst_15 = arith.constant 1.000000e+00 : f32
    %43 = vector.broadcast %cst_15 : f32 to vector<1x128xf32>
    %44 = arith.subf %43, %0 : vector<1x128xf32>
    %c1_i32_16 = arith.constant 1 : i32
    %45 = tpu.dynamic_rotate %39 by %c1_i32_16 dim 1 : vector<8x128xf32>, i32 -> vector<8x128xf32>
    %46 = vector.broadcast %44 : vector<1x128xf32> to vector<8x128xf32>
    %47 = arith.mulf %46, %45 : vector<8x128xf32>
    %48 = arith.addf %42, %47 : vector<8x128xf32>
    %49 = arith.maximumf %39, %48 : vector<8x128xf32>
    %c7_i32 = arith.constant 7 : i32
    %50 = tpu.dynamic_rotate %49 by %c7_i32 dim 0 : vector<8x128xf32>, i32 -> vector<8x128xf32>
    %51 = vector.broadcast %23 : vector<8x1xf32> to vector<8x128xf32>
    %52 = arith.mulf %51, %50 : vector<8x128xf32>
    %cst_17 = arith.constant 1.000000e+00 : f32
    %53 = vector.broadcast %cst_17 : f32 to vector<8x1xf32>
    %54 = arith.subf %53, %23 : vector<8x1xf32>
    %c1_i32_18 = arith.constant 1 : i32
    %55 = tpu.dynamic_rotate %49 by %c1_i32_18 dim 0 : vector<8x128xf32>, i32 -> vector<8x128xf32>
    %56 = vector.broadcast %54 : vector<8x1xf32> to vector<8x128xf32>
    %57 = arith.mulf %56, %55 : vector<8x128xf32>
    %58 = arith.addf %52, %57 : vector<8x128xf32>
    %59 = arith.maximumf %49, %58 : vector<8x128xf32>
    %cst_19 = arith.constant 1.000000e+00 : f32
    %60 = vector.broadcast %cst_19 : f32 to vector<1x128xf32>
    %61 = arith.subf %60, %0 : vector<1x128xf32>
    %cst_20 = arith.constant 2.000000e+00 : f32
    %62 = vector.broadcast %cst_20 : f32 to vector<1x128xf32>
    %63 = arith.mulf %62, %61 : vector<1x128xf32>
    %cst_21 = arith.constant 1.000000e+00 : f32
    %64 = vector.broadcast %cst_21 : f32 to vector<8x1xf32>
    %65 = arith.subf %64, %23 : vector<8x1xf32>
    %66 = vector.broadcast %63 : vector<1x128xf32> to vector<8x128xf32>
    %67 = vector.broadcast %65 : vector<8x1xf32> to vector<8x128xf32>
    %68 = arith.addf %66, %67 : vector<8x128xf32>
    %69 = arith.cmpf oeq, %39, %59 : vector<8x128xf32>
    %cst_22 = arith.constant 4.000000e+00 : f32
    %70 = vector.broadcast %cst_22 : f32 to vector<8x128xf32>
    %71 = arith.select %69, %68, %70 : vector<8x128xi1>, vector<8x128xf32>
    %c127_i32_23 = arith.constant 127 : i32
    %72 = tpu.dynamic_rotate %71 by %c127_i32_23 dim 1 : vector<8x128xf32>, i32 -> vector<8x128xf32>
    %73 = vector.broadcast %0 : vector<1x128xf32> to vector<8x128xf32>
    %74 = arith.mulf %73, %72 : vector<8x128xf32>
    %cst_24 = arith.constant 1.000000e+00 : f32
    %75 = vector.broadcast %cst_24 : f32 to vector<1x128xf32>
    %76 = arith.subf %75, %0 : vector<1x128xf32>
    %c1_i32_25 = arith.constant 1 : i32
    %77 = tpu.dynamic_rotate %71 by %c1_i32_25 dim 1 : vector<8x128xf32>, i32 -> vector<8x128xf32>
    %78 = vector.broadcast %76 : vector<1x128xf32> to vector<8x128xf32>
    %79 = arith.mulf %78, %77 : vector<8x128xf32>
    %80 = arith.addf %74, %79 : vector<8x128xf32>
    %81 = arith.minimumf %71, %80 : vector<8x128xf32>
    %c7_i32_26 = arith.constant 7 : i32
    %82 = tpu.dynamic_rotate %81 by %c7_i32_26 dim 0 : vector<8x128xf32>, i32 -> vector<8x128xf32>
    %83 = vector.broadcast %23 : vector<8x1xf32> to vector<8x128xf32>
    %84 = arith.mulf %83, %82 : vector<8x128xf32>
    %cst_27 = arith.constant 1.000000e+00 : f32
    %85 = vector.broadcast %cst_27 : f32 to vector<8x1xf32>
    %86 = arith.subf %85, %23 : vector<8x1xf32>
    %c1_i32_28 = arith.constant 1 : i32
    %87 = tpu.dynamic_rotate %81 by %c1_i32_28 dim 0 : vector<8x128xf32>, i32 -> vector<8x128xf32>
    %88 = vector.broadcast %86 : vector<8x1xf32> to vector<8x128xf32>
    %89 = arith.mulf %88, %87 : vector<8x128xf32>
    %90 = arith.addf %84, %89 : vector<8x128xf32>
    %91 = arith.minimumf %81, %90 : vector<8x128xf32>
    %92 = arith.cmpf oeq, %68, %91 : vector<8x128xf32>
    %93 = arith.andi %69, %92 : vector<8x128xi1>
    %c2_i32_29 = arith.constant 2 : i32
    %94 = tpu.dynamic_rotate %59 by %c2_i32_29 dim 1 : vector<8x128xf32>, i32 -> vector<8x128xf32>
    %95 = vector.broadcast %2 : vector<1x128xf32> to vector<8x128xf32>
    %96 = arith.mulf %94, %95 : vector<8x128xf32>
    %c2_i32_30 = arith.constant 2 : i32
    %97 = tpu.dynamic_rotate %96 by %c2_i32_30 dim 0 : vector<8x128xf32>, i32 -> vector<8x128xf32>
    %98 = vector.broadcast %33 : vector<8x1xf32> to vector<8x128xf32>
    %99 = arith.mulf %97, %98 : vector<8x128xf32>
    %c2_i32_31 = arith.constant 2 : i32
    %100 = tpu.dynamic_rotate %59 by %c2_i32_31 dim 1 : vector<8x128xf32>, i32 -> vector<8x128xf32>
    %101 = vector.broadcast %2 : vector<1x128xf32> to vector<8x128xf32>
    %102 = arith.mulf %100, %101 : vector<8x128xf32>
    %c2_i32_32 = arith.constant 2 : i32
    %103 = tpu.dynamic_rotate %59 by %c2_i32_32 dim 1 : vector<8x128xf32>, i32 -> vector<8x128xf32>
    %104 = vector.broadcast %2 : vector<1x128xf32> to vector<8x128xf32>
    %105 = arith.mulf %103, %104 : vector<8x128xf32>
    %c6_i32 = arith.constant 6 : i32
    %106 = tpu.dynamic_rotate %105 by %c6_i32 dim 0 : vector<8x128xf32>, i32 -> vector<8x128xf32>
    %107 = vector.broadcast %29 : vector<8x1xf32> to vector<8x128xf32>
    %108 = arith.mulf %106, %107 : vector<8x128xf32>
    %c2_i32_33 = arith.constant 2 : i32
    %109 = tpu.dynamic_rotate %59 by %c2_i32_33 dim 0 : vector<8x128xf32>, i32 -> vector<8x128xf32>
    %110 = vector.broadcast %33 : vector<8x1xf32> to vector<8x128xf32>
    %111 = arith.mulf %109, %110 : vector<8x128xf32>
    %c6_i32_34 = arith.constant 6 : i32
    %112 = tpu.dynamic_rotate %59 by %c6_i32_34 dim 0 : vector<8x128xf32>, i32 -> vector<8x128xf32>
    %113 = vector.broadcast %29 : vector<8x1xf32> to vector<8x128xf32>
    %114 = arith.mulf %112, %113 : vector<8x128xf32>
    %c126_i32 = arith.constant 126 : i32
    %115 = tpu.dynamic_rotate %59 by %c126_i32 dim 1 : vector<8x128xf32>, i32 -> vector<8x128xf32>
    %116 = vector.broadcast %1 : vector<1x128xf32> to vector<8x128xf32>
    %117 = arith.mulf %115, %116 : vector<8x128xf32>
    %c2_i32_35 = arith.constant 2 : i32
    %118 = tpu.dynamic_rotate %117 by %c2_i32_35 dim 0 : vector<8x128xf32>, i32 -> vector<8x128xf32>
    %119 = vector.broadcast %33 : vector<8x1xf32> to vector<8x128xf32>
    %120 = arith.mulf %118, %119 : vector<8x128xf32>
    %c126_i32_36 = arith.constant 126 : i32
    %121 = tpu.dynamic_rotate %59 by %c126_i32_36 dim 1 : vector<8x128xf32>, i32 -> vector<8x128xf32>
    %122 = vector.broadcast %1 : vector<1x128xf32> to vector<8x128xf32>
    %123 = arith.mulf %121, %122 : vector<8x128xf32>
    %c126_i32_37 = arith.constant 126 : i32
    %124 = tpu.dynamic_rotate %59 by %c126_i32_37 dim 1 : vector<8x128xf32>, i32 -> vector<8x128xf32>
    %125 = vector.broadcast %1 : vector<1x128xf32> to vector<8x128xf32>
    %126 = arith.mulf %124, %125 : vector<8x128xf32>
    %c6_i32_38 = arith.constant 6 : i32
    %127 = tpu.dynamic_rotate %126 by %c6_i32_38 dim 0 : vector<8x128xf32>, i32 -> vector<8x128xf32>
    %128 = vector.broadcast %29 : vector<8x1xf32> to vector<8x128xf32>
    %129 = arith.mulf %127, %128 : vector<8x128xf32>
    %c0_39 = arith.constant 0 : index
    %130 = memref.load %arg7[%c0_39] : memref<27xf32, #tpu.memory_space<smem>>
    %131 = vector.broadcast %130 : f32 to vector<8x128xf32>
    %132 = arith.mulf %131, %99 : vector<8x128xf32>
    %c1_40 = arith.constant 1 : index
    %133 = memref.load %arg7[%c1_40] : memref<27xf32, #tpu.memory_space<smem>>
    %134 = vector.broadcast %133 : f32 to vector<8x128xf32>
    %135 = arith.mulf %134, %102 : vector<8x128xf32>
    %136 = arith.addf %132, %135 : vector<8x128xf32>
    %c2_41 = arith.constant 2 : index
    %137 = memref.load %arg7[%c2_41] : memref<27xf32, #tpu.memory_space<smem>>
    %138 = vector.broadcast %137 : f32 to vector<8x128xf32>
    %139 = arith.mulf %138, %108 : vector<8x128xf32>
    %140 = arith.addf %136, %139 : vector<8x128xf32>
    %c3 = arith.constant 3 : index
    %141 = memref.load %arg7[%c3] : memref<27xf32, #tpu.memory_space<smem>>
    %142 = vector.broadcast %141 : f32 to vector<8x128xf32>
    %143 = arith.mulf %142, %111 : vector<8x128xf32>
    %144 = arith.addf %140, %143 : vector<8x128xf32>
    %c4 = arith.constant 4 : index
    %145 = memref.load %arg7[%c4] : memref<27xf32, #tpu.memory_space<smem>>
    %146 = vector.broadcast %145 : f32 to vector<8x128xf32>
    %147 = arith.mulf %146, %59 : vector<8x128xf32>
    %148 = arith.addf %144, %147 : vector<8x128xf32>
    %c5 = arith.constant 5 : index
    %149 = memref.load %arg7[%c5] : memref<27xf32, #tpu.memory_space<smem>>
    %150 = vector.broadcast %149 : f32 to vector<8x128xf32>
    %151 = arith.mulf %150, %114 : vector<8x128xf32>
    %152 = arith.addf %148, %151 : vector<8x128xf32>
    %c6 = arith.constant 6 : index
    %153 = memref.load %arg7[%c6] : memref<27xf32, #tpu.memory_space<smem>>
    %154 = vector.broadcast %153 : f32 to vector<8x128xf32>
    %155 = arith.mulf %154, %120 : vector<8x128xf32>
    %156 = arith.addf %152, %155 : vector<8x128xf32>
    %c7 = arith.constant 7 : index
    %157 = memref.load %arg7[%c7] : memref<27xf32, #tpu.memory_space<smem>>
    %158 = vector.broadcast %157 : f32 to vector<8x128xf32>
    %159 = arith.mulf %158, %123 : vector<8x128xf32>
    %160 = arith.addf %156, %159 : vector<8x128xf32>
    %c8 = arith.constant 8 : index
    %161 = memref.load %arg7[%c8] : memref<27xf32, #tpu.memory_space<smem>>
    %162 = vector.broadcast %161 : f32 to vector<8x128xf32>
    %163 = arith.mulf %162, %129 : vector<8x128xf32>
    %164 = arith.addf %160, %163 : vector<8x128xf32>
    %c0_42 = arith.constant 0 : index
    %165 = memref.load %arg8[%c0_42] : memref<3xf32, #tpu.memory_space<smem>>
    %166 = vector.broadcast %165 : f32 to vector<8x128xf32>
    %167 = arith.addf %164, %166 : vector<8x128xf32>
    %cst_43 = arith.constant 0.000000e+00 : f32
    %168 = vector.broadcast %cst_43 : f32 to vector<8x128xf32>
    %169 = arith.maximumf %167, %168 : vector<8x128xf32>
    %c9 = arith.constant 9 : index
    %170 = memref.load %arg7[%c9] : memref<27xf32, #tpu.memory_space<smem>>
    %171 = vector.broadcast %170 : f32 to vector<8x128xf32>
    %172 = arith.mulf %171, %99 : vector<8x128xf32>
    %c10 = arith.constant 10 : index
    %173 = memref.load %arg7[%c10] : memref<27xf32, #tpu.memory_space<smem>>
    %174 = vector.broadcast %173 : f32 to vector<8x128xf32>
    %175 = arith.mulf %174, %102 : vector<8x128xf32>
    %176 = arith.addf %172, %175 : vector<8x128xf32>
    %c11 = arith.constant 11 : index
    %177 = memref.load %arg7[%c11] : memref<27xf32, #tpu.memory_space<smem>>
    %178 = vector.broadcast %177 : f32 to vector<8x128xf32>
    %179 = arith.mulf %178, %108 : vector<8x128xf32>
    %180 = arith.addf %176, %179 : vector<8x128xf32>
    %c12 = arith.constant 12 : index
    %181 = memref.load %arg7[%c12] : memref<27xf32, #tpu.memory_space<smem>>
    %182 = vector.broadcast %181 : f32 to vector<8x128xf32>
    %183 = arith.mulf %182, %111 : vector<8x128xf32>
    %184 = arith.addf %180, %183 : vector<8x128xf32>
    %c13 = arith.constant 13 : index
    %185 = memref.load %arg7[%c13] : memref<27xf32, #tpu.memory_space<smem>>
    %186 = vector.broadcast %185 : f32 to vector<8x128xf32>
    %187 = arith.mulf %186, %59 : vector<8x128xf32>
    %188 = arith.addf %184, %187 : vector<8x128xf32>
    %c14 = arith.constant 14 : index
    %189 = memref.load %arg7[%c14] : memref<27xf32, #tpu.memory_space<smem>>
    %190 = vector.broadcast %189 : f32 to vector<8x128xf32>
    %191 = arith.mulf %190, %114 : vector<8x128xf32>
    %192 = arith.addf %188, %191 : vector<8x128xf32>
    %c15 = arith.constant 15 : index
    %193 = memref.load %arg7[%c15] : memref<27xf32, #tpu.memory_space<smem>>
    %194 = vector.broadcast %193 : f32 to vector<8x128xf32>
    %195 = arith.mulf %194, %120 : vector<8x128xf32>
    %196 = arith.addf %192, %195 : vector<8x128xf32>
    %c16 = arith.constant 16 : index
    %197 = memref.load %arg7[%c16] : memref<27xf32, #tpu.memory_space<smem>>
    %198 = vector.broadcast %197 : f32 to vector<8x128xf32>
    %199 = arith.mulf %198, %123 : vector<8x128xf32>
    %200 = arith.addf %196, %199 : vector<8x128xf32>
    %c17 = arith.constant 17 : index
    %201 = memref.load %arg7[%c17] : memref<27xf32, #tpu.memory_space<smem>>
    %202 = vector.broadcast %201 : f32 to vector<8x128xf32>
    %203 = arith.mulf %202, %129 : vector<8x128xf32>
    %204 = arith.addf %200, %203 : vector<8x128xf32>
    %c1_44 = arith.constant 1 : index
    %205 = memref.load %arg8[%c1_44] : memref<3xf32, #tpu.memory_space<smem>>
    %206 = vector.broadcast %205 : f32 to vector<8x128xf32>
    %207 = arith.addf %204, %206 : vector<8x128xf32>
    %cst_45 = arith.constant 0.000000e+00 : f32
    %208 = vector.broadcast %cst_45 : f32 to vector<8x128xf32>
    %209 = arith.maximumf %207, %208 : vector<8x128xf32>
    %c18 = arith.constant 18 : index
    %210 = memref.load %arg7[%c18] : memref<27xf32, #tpu.memory_space<smem>>
    %211 = vector.broadcast %210 : f32 to vector<8x128xf32>
    %212 = arith.mulf %211, %99 : vector<8x128xf32>
    %c19 = arith.constant 19 : index
    %213 = memref.load %arg7[%c19] : memref<27xf32, #tpu.memory_space<smem>>
    %214 = vector.broadcast %213 : f32 to vector<8x128xf32>
    %215 = arith.mulf %214, %102 : vector<8x128xf32>
    %216 = arith.addf %212, %215 : vector<8x128xf32>
    %c20 = arith.constant 20 : index
    %217 = memref.load %arg7[%c20] : memref<27xf32, #tpu.memory_space<smem>>
    %218 = vector.broadcast %217 : f32 to vector<8x128xf32>
    %219 = arith.mulf %218, %108 : vector<8x128xf32>
    %220 = arith.addf %216, %219 : vector<8x128xf32>
    %c21 = arith.constant 21 : index
    %221 = memref.load %arg7[%c21] : memref<27xf32, #tpu.memory_space<smem>>
    %222 = vector.broadcast %221 : f32 to vector<8x128xf32>
    %223 = arith.mulf %222, %111 : vector<8x128xf32>
    %224 = arith.addf %220, %223 : vector<8x128xf32>
    %c22 = arith.constant 22 : index
    %225 = memref.load %arg7[%c22] : memref<27xf32, #tpu.memory_space<smem>>
    %226 = vector.broadcast %225 : f32 to vector<8x128xf32>
    %227 = arith.mulf %226, %59 : vector<8x128xf32>
    %228 = arith.addf %224, %227 : vector<8x128xf32>
    %c23 = arith.constant 23 : index
    %229 = memref.load %arg7[%c23] : memref<27xf32, #tpu.memory_space<smem>>
    %230 = vector.broadcast %229 : f32 to vector<8x128xf32>
    %231 = arith.mulf %230, %114 : vector<8x128xf32>
    %232 = arith.addf %228, %231 : vector<8x128xf32>
    %c24 = arith.constant 24 : index
    %233 = memref.load %arg7[%c24] : memref<27xf32, #tpu.memory_space<smem>>
    %234 = vector.broadcast %233 : f32 to vector<8x128xf32>
    %235 = arith.mulf %234, %120 : vector<8x128xf32>
    %236 = arith.addf %232, %235 : vector<8x128xf32>
    %c25 = arith.constant 25 : index
    %237 = memref.load %arg7[%c25] : memref<27xf32, #tpu.memory_space<smem>>
    %238 = vector.broadcast %237 : f32 to vector<8x128xf32>
    %239 = arith.mulf %238, %123 : vector<8x128xf32>
    %240 = arith.addf %236, %239 : vector<8x128xf32>
    %c26 = arith.constant 26 : index
    %241 = memref.load %arg7[%c26] : memref<27xf32, #tpu.memory_space<smem>>
    %242 = vector.broadcast %241 : f32 to vector<8x128xf32>
    %243 = arith.mulf %242, %129 : vector<8x128xf32>
    %244 = arith.addf %240, %243 : vector<8x128xf32>
    %c2_46 = arith.constant 2 : index
    %245 = memref.load %arg8[%c2_46] : memref<3xf32, #tpu.memory_space<smem>>
    %246 = vector.broadcast %245 : f32 to vector<8x128xf32>
    %247 = arith.addf %244, %246 : vector<8x128xf32>
    %cst_47 = arith.constant 0.000000e+00 : f32
    %248 = vector.broadcast %cst_47 : f32 to vector<8x128xf32>
    %249 = arith.maximumf %247, %248 : vector<8x128xf32>
    %c0_48 = arith.constant 0 : index
    %250 = memref.load %arg9[%c0_48] : memref<27xf32, #tpu.memory_space<smem>>
    %251 = vector.broadcast %250 : f32 to vector<8x128xf32>
    %252 = arith.mulf %251, %169 : vector<8x128xf32>
    %c9_49 = arith.constant 9 : index
    %253 = memref.load %arg9[%c9_49] : memref<27xf32, #tpu.memory_space<smem>>
    %254 = vector.broadcast %253 : f32 to vector<8x128xf32>
    %255 = arith.mulf %254, %209 : vector<8x128xf32>
    %256 = arith.addf %252, %255 : vector<8x128xf32>
    %c18_50 = arith.constant 18 : index
    %257 = memref.load %arg9[%c18_50] : memref<27xf32, #tpu.memory_space<smem>>
    %258 = vector.broadcast %257 : f32 to vector<8x128xf32>
    %259 = arith.mulf %258, %249 : vector<8x128xf32>
    %260 = arith.addf %256, %259 : vector<8x128xf32>
    %c2_i32_51 = arith.constant 2 : i32
    %261 = tpu.dynamic_rotate %260 by %c2_i32_51 dim 1 : vector<8x128xf32>, i32 -> vector<8x128xf32>
    %262 = vector.broadcast %2 : vector<1x128xf32> to vector<8x128xf32>
    %263 = arith.mulf %261, %262 : vector<8x128xf32>
    %c2_i32_52 = arith.constant 2 : i32
    %264 = tpu.dynamic_rotate %263 by %c2_i32_52 dim 0 : vector<8x128xf32>, i32 -> vector<8x128xf32>
    %265 = vector.broadcast %33 : vector<8x1xf32> to vector<8x128xf32>
    %266 = arith.mulf %264, %265 : vector<8x128xf32>
    %c1_53 = arith.constant 1 : index
    %267 = memref.load %arg9[%c1_53] : memref<27xf32, #tpu.memory_space<smem>>
    %268 = vector.broadcast %267 : f32 to vector<8x128xf32>
    %269 = arith.mulf %268, %169 : vector<8x128xf32>
    %c10_54 = arith.constant 10 : index
    %270 = memref.load %arg9[%c10_54] : memref<27xf32, #tpu.memory_space<smem>>
    %271 = vector.broadcast %270 : f32 to vector<8x128xf32>
    %272 = arith.mulf %271, %209 : vector<8x128xf32>
    %273 = arith.addf %269, %272 : vector<8x128xf32>
    %c19_55 = arith.constant 19 : index
    %274 = memref.load %arg9[%c19_55] : memref<27xf32, #tpu.memory_space<smem>>
    %275 = vector.broadcast %274 : f32 to vector<8x128xf32>
    %276 = arith.mulf %275, %249 : vector<8x128xf32>
    %277 = arith.addf %273, %276 : vector<8x128xf32>
    %c2_i32_56 = arith.constant 2 : i32
    %278 = tpu.dynamic_rotate %277 by %c2_i32_56 dim 1 : vector<8x128xf32>, i32 -> vector<8x128xf32>
    %279 = vector.broadcast %2 : vector<1x128xf32> to vector<8x128xf32>
    %280 = arith.mulf %278, %279 : vector<8x128xf32>
    %281 = arith.addf %266, %280 : vector<8x128xf32>
    %c2_57 = arith.constant 2 : index
    %282 = memref.load %arg9[%c2_57] : memref<27xf32, #tpu.memory_space<smem>>
    %283 = vector.broadcast %282 : f32 to vector<8x128xf32>
    %284 = arith.mulf %283, %169 : vector<8x128xf32>
    %c11_58 = arith.constant 11 : index
    %285 = memref.load %arg9[%c11_58] : memref<27xf32, #tpu.memory_space<smem>>
    %286 = vector.broadcast %285 : f32 to vector<8x128xf32>
    %287 = arith.mulf %286, %209 : vector<8x128xf32>
    %288 = arith.addf %284, %287 : vector<8x128xf32>
    %c20_59 = arith.constant 20 : index
    %289 = memref.load %arg9[%c20_59] : memref<27xf32, #tpu.memory_space<smem>>
    %290 = vector.broadcast %289 : f32 to vector<8x128xf32>
    %291 = arith.mulf %290, %249 : vector<8x128xf32>
    %292 = arith.addf %288, %291 : vector<8x128xf32>
    %c2_i32_60 = arith.constant 2 : i32
    %293 = tpu.dynamic_rotate %292 by %c2_i32_60 dim 1 : vector<8x128xf32>, i32 -> vector<8x128xf32>
    %294 = vector.broadcast %2 : vector<1x128xf32> to vector<8x128xf32>
    %295 = arith.mulf %293, %294 : vector<8x128xf32>
    %c6_i32_61 = arith.constant 6 : i32
    %296 = tpu.dynamic_rotate %295 by %c6_i32_61 dim 0 : vector<8x128xf32>, i32 -> vector<8x128xf32>
    %297 = vector.broadcast %29 : vector<8x1xf32> to vector<8x128xf32>
    %298 = arith.mulf %296, %297 : vector<8x128xf32>
    %299 = arith.addf %281, %298 : vector<8x128xf32>
    %c3_62 = arith.constant 3 : index
    %300 = memref.load %arg9[%c3_62] : memref<27xf32, #tpu.memory_space<smem>>
    %301 = vector.broadcast %300 : f32 to vector<8x128xf32>
    %302 = arith.mulf %301, %169 : vector<8x128xf32>
    %c12_63 = arith.constant 12 : index
    %303 = memref.load %arg9[%c12_63] : memref<27xf32, #tpu.memory_space<smem>>
    %304 = vector.broadcast %303 : f32 to vector<8x128xf32>
    %305 = arith.mulf %304, %209 : vector<8x128xf32>
    %306 = arith.addf %302, %305 : vector<8x128xf32>
    %c21_64 = arith.constant 21 : index
    %307 = memref.load %arg9[%c21_64] : memref<27xf32, #tpu.memory_space<smem>>
    %308 = vector.broadcast %307 : f32 to vector<8x128xf32>
    %309 = arith.mulf %308, %249 : vector<8x128xf32>
    %310 = arith.addf %306, %309 : vector<8x128xf32>
    %c2_i32_65 = arith.constant 2 : i32
    %311 = tpu.dynamic_rotate %310 by %c2_i32_65 dim 0 : vector<8x128xf32>, i32 -> vector<8x128xf32>
    %312 = vector.broadcast %33 : vector<8x1xf32> to vector<8x128xf32>
    %313 = arith.mulf %311, %312 : vector<8x128xf32>
    %314 = arith.addf %299, %313 : vector<8x128xf32>
    %c4_66 = arith.constant 4 : index
    %315 = memref.load %arg9[%c4_66] : memref<27xf32, #tpu.memory_space<smem>>
    %316 = vector.broadcast %315 : f32 to vector<8x128xf32>
    %317 = arith.mulf %316, %169 : vector<8x128xf32>
    %c13_67 = arith.constant 13 : index
    %318 = memref.load %arg9[%c13_67] : memref<27xf32, #tpu.memory_space<smem>>
    %319 = vector.broadcast %318 : f32 to vector<8x128xf32>
    %320 = arith.mulf %319, %209 : vector<8x128xf32>
    %321 = arith.addf %317, %320 : vector<8x128xf32>
    %c22_68 = arith.constant 22 : index
    %322 = memref.load %arg9[%c22_68] : memref<27xf32, #tpu.memory_space<smem>>
    %323 = vector.broadcast %322 : f32 to vector<8x128xf32>
    %324 = arith.mulf %323, %249 : vector<8x128xf32>
    %325 = arith.addf %321, %324 : vector<8x128xf32>
    %326 = arith.addf %314, %325 : vector<8x128xf32>
    %c5_69 = arith.constant 5 : index
    %327 = memref.load %arg9[%c5_69] : memref<27xf32, #tpu.memory_space<smem>>
    %328 = vector.broadcast %327 : f32 to vector<8x128xf32>
    %329 = arith.mulf %328, %169 : vector<8x128xf32>
    %c14_70 = arith.constant 14 : index
    %330 = memref.load %arg9[%c14_70] : memref<27xf32, #tpu.memory_space<smem>>
    %331 = vector.broadcast %330 : f32 to vector<8x128xf32>
    %332 = arith.mulf %331, %209 : vector<8x128xf32>
    %333 = arith.addf %329, %332 : vector<8x128xf32>
    %c23_71 = arith.constant 23 : index
    %334 = memref.load %arg9[%c23_71] : memref<27xf32, #tpu.memory_space<smem>>
    %335 = vector.broadcast %334 : f32 to vector<8x128xf32>
    %336 = arith.mulf %335, %249 : vector<8x128xf32>
    %337 = arith.addf %333, %336 : vector<8x128xf32>
    %c6_i32_72 = arith.constant 6 : i32
    %338 = tpu.dynamic_rotate %337 by %c6_i32_72 dim 0 : vector<8x128xf32>, i32 -> vector<8x128xf32>
    %339 = vector.broadcast %29 : vector<8x1xf32> to vector<8x128xf32>
    %340 = arith.mulf %338, %339 : vector<8x128xf32>
    %341 = arith.addf %326, %340 : vector<8x128xf32>
    %c6_73 = arith.constant 6 : index
    %342 = memref.load %arg9[%c6_73] : memref<27xf32, #tpu.memory_space<smem>>
    %343 = vector.broadcast %342 : f32 to vector<8x128xf32>
    %344 = arith.mulf %343, %169 : vector<8x128xf32>
    %c15_74 = arith.constant 15 : index
    %345 = memref.load %arg9[%c15_74] : memref<27xf32, #tpu.memory_space<smem>>
    %346 = vector.broadcast %345 : f32 to vector<8x128xf32>
    %347 = arith.mulf %346, %209 : vector<8x128xf32>
    %348 = arith.addf %344, %347 : vector<8x128xf32>
    %c24_75 = arith.constant 24 : index
    %349 = memref.load %arg9[%c24_75] : memref<27xf32, #tpu.memory_space<smem>>
    %350 = vector.broadcast %349 : f32 to vector<8x128xf32>
    %351 = arith.mulf %350, %249 : vector<8x128xf32>
    %352 = arith.addf %348, %351 : vector<8x128xf32>
    %c126_i32_76 = arith.constant 126 : i32
    %353 = tpu.dynamic_rotate %352 by %c126_i32_76 dim 1 : vector<8x128xf32>, i32 -> vector<8x128xf32>
    %354 = vector.broadcast %1 : vector<1x128xf32> to vector<8x128xf32>
    %355 = arith.mulf %353, %354 : vector<8x128xf32>
    %c2_i32_77 = arith.constant 2 : i32
    %356 = tpu.dynamic_rotate %355 by %c2_i32_77 dim 0 : vector<8x128xf32>, i32 -> vector<8x128xf32>
    %357 = vector.broadcast %33 : vector<8x1xf32> to vector<8x128xf32>
    %358 = arith.mulf %356, %357 : vector<8x128xf32>
    %359 = arith.addf %341, %358 : vector<8x128xf32>
    %c7_78 = arith.constant 7 : index
    %360 = memref.load %arg9[%c7_78] : memref<27xf32, #tpu.memory_space<smem>>
    %361 = vector.broadcast %360 : f32 to vector<8x128xf32>
    %362 = arith.mulf %361, %169 : vector<8x128xf32>
    %c16_79 = arith.constant 16 : index
    %363 = memref.load %arg9[%c16_79] : memref<27xf32, #tpu.memory_space<smem>>
    %364 = vector.broadcast %363 : f32 to vector<8x128xf32>
    %365 = arith.mulf %364, %209 : vector<8x128xf32>
    %366 = arith.addf %362, %365 : vector<8x128xf32>
    %c25_80 = arith.constant 25 : index
    %367 = memref.load %arg9[%c25_80] : memref<27xf32, #tpu.memory_space<smem>>
    %368 = vector.broadcast %367 : f32 to vector<8x128xf32>
    %369 = arith.mulf %368, %249 : vector<8x128xf32>
    %370 = arith.addf %366, %369 : vector<8x128xf32>
    %c126_i32_81 = arith.constant 126 : i32
    %371 = tpu.dynamic_rotate %370 by %c126_i32_81 dim 1 : vector<8x128xf32>, i32 -> vector<8x128xf32>
    %372 = vector.broadcast %1 : vector<1x128xf32> to vector<8x128xf32>
    %373 = arith.mulf %371, %372 : vector<8x128xf32>
    %374 = arith.addf %359, %373 : vector<8x128xf32>
    %c8_82 = arith.constant 8 : index
    %375 = memref.load %arg9[%c8_82] : memref<27xf32, #tpu.memory_space<smem>>
    %376 = vector.broadcast %375 : f32 to vector<8x128xf32>
    %377 = arith.mulf %376, %169 : vector<8x128xf32>
    %c17_83 = arith.constant 17 : index
    %378 = memref.load %arg9[%c17_83] : memref<27xf32, #tpu.memory_space<smem>>
    %379 = vector.broadcast %378 : f32 to vector<8x128xf32>
    %380 = arith.mulf %379, %209 : vector<8x128xf32>
    %381 = arith.addf %377, %380 : vector<8x128xf32>
    %c26_84 = arith.constant 26 : index
    %382 = memref.load %arg9[%c26_84] : memref<27xf32, #tpu.memory_space<smem>>
    %383 = vector.broadcast %382 : f32 to vector<8x128xf32>
    %384 = arith.mulf %383, %249 : vector<8x128xf32>
    %385 = arith.addf %381, %384 : vector<8x128xf32>
    %c126_i32_85 = arith.constant 126 : i32
    %386 = tpu.dynamic_rotate %385 by %c126_i32_85 dim 1 : vector<8x128xf32>, i32 -> vector<8x128xf32>
    %387 = vector.broadcast %1 : vector<1x128xf32> to vector<8x128xf32>
    %388 = arith.mulf %386, %387 : vector<8x128xf32>
    %c6_i32_86 = arith.constant 6 : i32
    %389 = tpu.dynamic_rotate %388 by %c6_i32_86 dim 0 : vector<8x128xf32>, i32 -> vector<8x128xf32>
    %390 = vector.broadcast %29 : vector<8x1xf32> to vector<8x128xf32>
    %391 = arith.mulf %389, %390 : vector<8x128xf32>
    %392 = arith.addf %374, %391 : vector<8x128xf32>
    %c0_87 = arith.constant 0 : index
    %393 = memref.load %arg10[%c0_87] : memref<1xf32, #tpu.memory_space<smem>>
    %394 = vector.broadcast %393 : f32 to vector<8x128xf32>
    %395 = arith.addf %392, %394 : vector<8x128xf32>
    %cst_88 = arith.constant 0.000000e+00 : f32
    %396 = vector.broadcast %cst_88 : f32 to vector<8x128xf32>
    %397 = arith.maximumf %395, %396 : vector<8x128xf32>
    %cst_89 = arith.constant 0.000000e+00 : f32
    %398 = vector.broadcast %cst_89 : f32 to vector<8x128xf32>
    %399 = arith.select %93, %397, %398 : vector<8x128xi1>, vector<8x128xf32>
    %c0_90 = arith.constant 0 : index
    %c0_91 = arith.constant 0 : index
    %400 = vector.load %arg4[%c0_90, %c0_91] : memref<4x8xf32, #tpu.memory_space<vmem>>, vector<4x8xf32>
    %cst_92 = arith.constant dense<0.000000e+00> : vector<4x128xf32>
    %401 = tpu.matmul %400, %399, %cst_92 {dimension_numbers = #tpu.dot_dimension_numbers<[1], [0], [0], [1], [0, 0, 1, 1], [], []>} : vector<4x8xf32>, vector<8x128xf32>, vector<4x128xf32> -> vector<4x128xf32>
    %c0_93 = arith.constant 0 : index
    %c0_94 = arith.constant 0 : index
    %402 = vector.load %arg5[%c0_93, %c0_94] : memref<4x1xf32, #tpu.memory_space<vmem>>, vector<4x1xf32>
    %403 = vector.broadcast %402 : vector<4x1xf32> to vector<4x128xf32>
    %404 = arith.addf %401, %403 : vector<4x128xf32>
    %c0_95 = arith.constant 0 : index
    %c0_96 = arith.constant 0 : index
    %405 = vector.load %arg11[%c0_95, %c0_96] : memref<4x128xf32, #tpu.memory_space<vmem>>, vector<4x128xf32>
    tpu.vector_store %arg11[%c0_95, %c0_96], %404 {strides = array<i32>} : memref<4x128xf32, #tpu.memory_space<vmem>>, vector<4x128xf32>,
    return
  }
  func.func @transform_0(%arg0: i32) -> (i32, i32) {
    %c0_i32 = arith.constant 0 : i32
    %c0_i32_0 = arith.constant 0 : i32
    return %c0_i32, %arg0 : i32, i32
  }
  func.func @transform_1(%arg0: i32) -> (i32, i32) {
    %c0_i32 = arith.constant 0 : i32
    %c0_i32_0 = arith.constant 0 : i32
    %c0_i32_1 = arith.constant 0 : i32
    return %c0_i32, %c0_i32_0 : i32, i32
  }
  func.func @transform_2(%arg0: i32) -> (i32, i32) {
    %c0_i32 = arith.constant 0 : i32
    %c0_i32_0 = arith.constant 0 : i32
    %c0_i32_1 = arith.constant 0 : i32
    return %c0_i32, %c0_i32_0 : i32, i32
  }
  func.func @transform_3(%arg0: i32) -> (i32, i32) {
    %c0_i32 = arith.constant 0 : i32
    %c0_i32_0 = arith.constant 0 : i32
    %c0_i32_1 = arith.constant 0 : i32
    return %c0_i32, %c0_i32_0 : i32, i32
  }
  func.func @transform_4(%arg0: i32) -> (i32, i32) {
    %c0_i32 = arith.constant 0 : i32
    %c0_i32_0 = arith.constant 0 : i32
    %c0_i32_1 = arith.constant 0 : i32
    return %c0_i32, %c0_i32_0 : i32, i32
  }
  func.func @transform_5(%arg0: i32) -> (i32, i32) {
    %c0_i32 = arith.constant 0 : i32
    %c0_i32_0 = arith.constant 0 : i32
    return %c0_i32, %arg0 : i32, i32
  }
  func.func @transform_6(%arg0: i32) -> i32 {
    %c0_i32 = arith.constant 0 : i32
    %c0_i32_0 = arith.constant 0 : i32
    return %c0_i32 : i32
  }
  func.func @transform_7(%arg0: i32) -> i32 {
    %c0_i32 = arith.constant 0 : i32
    %c0_i32_0 = arith.constant 0 : i32
    return %c0_i32 : i32
  }
  func.func @transform_8(%arg0: i32) -> i32 {
    %c0_i32 = arith.constant 0 : i32
    %c0_i32_0 = arith.constant 0 : i32
    return %c0_i32 : i32
  }
  func.func @transform_9(%arg0: i32) -> i32 {
    %c0_i32 = arith.constant 0 : i32
    %c0_i32_0 = arith.constant 0 : i32
    return %c0_i32 : i32
  }
  func.func @transform_10(%arg0: i32) -> (i32, i32) {
    %c0_i32 = arith.constant 0 : i32
    %c0_i32_0 = arith.constant 0 : i32
    return %c0_i32, %arg0 : i32, i32
  }
}

</mosaic_0001>

<bundles_post_ra>
// kernel: positional_encoding.1
= control target key start
LH: loop header
LB: loop body
LE: loop exit
PB: predicated region body
PF: predicated region fallthrough
CT: control target
= control target key end

     0   :  { %s1051_s0 = inlined_call_operand.vmem [shape: f32[64,128], index: 0, kind: input, shape index: {}]   ;;  %s1052_s1 = inlined_call_operand.vmem [shape: f32[8,64], index: 1, kind: input, shape index: {}]   ;;  %s1053_s2 = inlined_call_operand.vmem [shape: f32[8,1], index: 2, kind: input, shape index: {}]   ;;  %s1054_s3 = inlined_call_operand.vmem [shape: f32[4,8], index: 3, kind: input, shape index: {}]   ;;  %s1055_s4 = inlined_call_operand.vmem [shape: f32[4,1], index: 4, kind: input, shape index: {}]   ;;  %s1056_s5 = inlined_call_operand.vmem [shape: f32[8,128], index: 5, kind: input, shape index: {}]   ;;  %s1057_s6 = inlined_call_operand.vmem [shape: f32[27], index: 6, kind: input, shape index: {}]   ;;  %s1058_s7 = inlined_call_operand.vmem [shape: f32[3], index: 7, kind: input, shape index: {}]   ;;  %s1059_s8 = inlined_call_operand.vmem [shape: f32[27], index: 8, kind: input, shape index: {}]   ;;  %s1060_s9 = inlined_call_operand.<no memory space> [shape: f32[1], index: 9, kind: input, shape index: {}]   ;;  %s1061_s10 = inlined_call_operand.vmem [shape: f32[4,128], index: 10, kind: output, shape index: {}]  }
   0x1   :  { %1068 = sst [smem:[#allocation10_spill]] %s1054_s3 }
   0x2   :  { %1069 = sst [smem:[#allocation11_spill]] %s1061_s10 }
   0x3   :  { %16 = vsyncpa [#allocation4], 0 }
   0x4   :  { %17 = vsyncpa [#allocation6], 0  ;;  %s44_s15 = sshll.u32 %s1058_s7, 4  ;;  %s35_s18 = sshll.u32 %s1057_s6, 4  ;;  %s45_s15 = int_to_ptr.vmem [resolvable:$true] %s44_s15  ;;  %s36_s18 = int_to_ptr.vmem [resolvable:$true] %s35_s18 }
   0x5   :  { %s608_s19 = smov [#allocation5]   ;;  %s609_s20 = smov [#allocation3]  }
   0x6   :  { %47 = dma.vmem_to_smem %s45_s15, 16, %s608_s19, [#allocation6]  }
   0x7   :  { %38 = dma.vmem_to_smem %s36_s18, 16, %s609_s20, [#allocation4]  }
   0x8   :  { %s53_s23 = sshll.u32 %s1059_s8, 4  ;;  %s610_s24 = smov [#allocation7]   ;;  %s54_s23 = int_to_ptr.vmem [resolvable:$true] %s53_s23 }
   0x9   :  { %56 = dma.vmem_to_smem %s54_s23, 16, %s610_s24, [#allocation6]  }
   0xa   :  { %604 = dma.done.wait [#allocation4], 16  }
   0xb   :  { %605 = vsyncadd [#allocation4], 4294967280 }
   0xc   :  { %606 = dma.done.wait [#allocation6], 32  }
   0xd   :  { %607 = vsyncadd [#allocation6], 4294967264 }
   0xe   :  { %71 = sfence }
   0xf   :  { %v107_v0 = vld [vmem:[%s1051_s0 + $0x38] sm:$0xff]  ;;  %v106_v1 = vld [vmem:[%s1051_s0 + $0x30] sm:$0xff]  ;;  %v611_v2 = vmov 0   ;;  %v105_v3 = vld [vmem:[%s1051_s0 + $0x28] sm:$0xff]  ;;  %vm114_vm0 = vcmask 523264   ;;  %s1063_s21 = smov 1   ;;  %v75_v14 = vlaneseq }
  0x10   :  { %126 = vmatpush.msra.mxu0 %v107_v0  ;;  %563 = vset.pattern.permute.xlu0 %v611_v2  ;;  %v108_v4 = vld [vmem:[%s1053_s2] sm:$0xff]  ;;  %v103_v6 = vld [vmem:[%s1051_s0 + $0x18] sm:$0xff]  ;;  %v102_v7 = vld [vmem:[%s1051_s0 + $0x10] sm:$0xff]  ;;  %s1062_s22 = smov 127   ;;  %v614_v17 = vmov 0.0   ;;  %s1064_s7 = smov 126  }
  0x11   :  { %564 = vset.pattern.permute.xlu1 %v611_v2  ;;  %v104_v5 = vld [vmem:[%s1051_s0 + $0x20] sm:$0xff]  ;;  %111 = vperm.xlu0 %563, %v108_v4   ;;  %v101_v8 = vld [vmem:[%s1051_s0 + $0x8] sm:$0xff]  ;;  %v76_v15 = vshrl.u32 %v75_v14, 7  ;;  %s1066_s25 = smov 2   ;;  %s747_s6 = sld [smem:[#allocation3 + $0x4]]  ;;  %vm463_vm6 = vcmask 64512  }
  0x12   :  { %127 = vmatpush.msra.mxu0 %v106_v1  ;;  %v100_v9 = vld [vmem:[%s1051_s0] sm:$0xff]  ;;  %s749_s26 = sld [smem:[#allocation3 + $0xd]] }
  0x13   :  { %v99_v10 = vld [vmem:[%s1052_s1] sm:$0xff]  ;;  %v92_v16 = vadd.s32 2, %v76_v15  ;;  %vm96_vm1 = vcmp.ge.s32.totalorder %v76_v15, 2  ;;  %v81_v22 = vand.u32 1, %v76_v15  ;;  %s751_s8 = sld [smem:[#allocation3 + $0x16]] }
  0x14   :  { %128 = vmatpush.msra.mxu0 %v105_v3  ;;  %v717_v18 = vsel %vm96_vm1, 1.0, %v614_v17  ;;  %v72_v20 = vld [vmem:[%s1056_s5] sm:$0x1]  ;;  %s753_s27 = sld [smem:[#allocation3 + $0x3]]  ;;  %v792_v39 = vld [vmem:[%s1056_s5 + $0x2] ss:$0 sm:$0xff] }
  0x15   :  { %vm93_vm2 = vcmp.lt.s32.totalorder %v92_v16, 4  ;;  %v142_v21 = vsub.f32 1.0, %v72_v20  ;;  %v729_v24 = vld [vmem:[%s1056_s5] ss:$0 sm:$0xff]  ;;  %vm89_vm3 = vcmp.eq.s32.totalorder %v81_v22, 0  ;;  %s755_s28 = sld [smem:[#allocation3 + $0x5]] }
  0x16   :  { %129 = vmatpush.msra.mxu0 %v104_v5  ;;  %v719_v19 = vsel %vm93_vm2, 1.0, %v614_v17  ;;  %v733_v29 = vsel %vm89_vm3, 1.0, %v614_v17  ;;  %s757_s29 = sld [smem:[#allocation3 + $0xc]]  ;;  %v805_v42 = vld [vmem:[%s1056_s5 + $0x1] ss:$0 sm:$0xff] }
  0x17   :  { %v724_v23 = vperm.slane %v142_v21, 0  ;;  %v737_v32 = vsub.f32 1.0, %v733_v29  ;;  %s759_s30 = sld [smem:[#allocation3 + $0x6]]  ;;  %v213_v40 = vstv %s747_s6  ;;  %v812_v47 = vmul.f32 2.0, %v142_v21 }
  0x18   :  { %130 = vmatpush.msra.mxu0 %v103_v6  ;;  %s761_s11 = sld [smem:[#allocation3 + $0x7]]  ;;  %v252_v41 = vstv %s749_s26 }
  0x19   :  { %s763_s12 = sld [smem:[#allocation3 + $0x8]]  ;;  %v291_v45 = vstv %s751_s8 }
  0x1a   :  { %131 = vmatpush.msra.mxu0 %v102_v7  ;;  %s765_s13 = sld [smem:[#allocation3 + $0xf]]  ;;  %v209_v51 = vstv %s753_s27 }
  0x1b   :  { %s767_s14 = sld [smem:[#allocation3 + $0x10]]  ;;  %v217_v53 = vstv %s755_s28 }
  0x1c   :  { %132 = vmatpush.msra.mxu0 %v101_v8  ;;  %s769_s15 = sld [smem:[#allocation3 + $0x11]]  ;;  %v248_v54 = vstv %s757_s29 }
  0x1d   :  { %s771_s16 = sld [smem:[#allocation3 + $0x18]]  ;;  %v221_v43 = vstv %s759_s30 }
  0x1e   :  { %133 = vmatpush.msra.mxu0 %v100_v9  ;;  %s773_s17 = sld [smem:[#allocation3 + $0xe]]  ;;  %v225_v44 = vstv %s761_s11 }
  0x1f   :  { %497 = vmatmul.msk.f32.vlgmr.msra.gmra.mxu0 %vm114_vm0, %v99_v10  ;;  %s775_s2 = sld [smem:[#allocation3]]  ;;  %v229_v48 = vstv %s763_s12 }
  0x20   :  { %s777_s18 = sld [smem:[#allocation3 + $0x1]]  ;;  %v260_v49 = vstv %s765_s13 }
  0x21   :  { %s779_s19 = sld [smem:[#allocation3 + $0x2]] }
  0x22   :  { %s781_s20 = sld [smem:[#allocation3 + $0x9]] }
  0x23   :  { %s783_s0 = sld [smem:[#allocation3 + $0xa]] }
  0x24   :  { %s785_s1 = sld [smem:[#allocation3 + $0xb]]  ;;  %v256_v55 = vstv %s773_s17 }
  0x25   :  { %s787_s23 = sld [smem:[#allocation3 + $0x12]]  ;;  %v198_v58 = vstv %s775_s2 }
  0x26   :  { %s816_s24 = sld [smem:[#allocation3 + $0x1a]]  ;;  %v201_v62 = vstv %s777_s18 }
  0x27   :  { %s823_s3 = sld [smem:[#allocation3 + $0x17]]  ;;  %v205_v5 = vstv %s779_s19 }
  0x28   :  { %s828_s5 = sld [smem:[#allocation5]]  ;;  %v237_v63 = vstv %s781_s20 }
  0x29   :  { %v240_v0 = vstv %s783_s0  ;;  %s836_s10 = sld [smem:[#allocation5 + $0x1]] }
  0x2a   :  { %s840_s27 = sld [smem:[#allocation5 + $0x2]]  ;;  %v244_v6 = vstv %s785_s1 }
  0x2b   :  { %v276_v1 = vstv %s787_s23  ;;  %s848_s29 = sld [smem:[#allocation7 + $0x2]] }
  0x2c   :  { %s850_s2 = sld [smem:[#allocation7 + $0xb]] }
  0x2d   :  { %s860_s18 = sld [smem:[#allocation7 + $0xa]] }
  0x2e   :  { %s862_s19 = sld [smem:[#allocation7 + $0x13]] }
  0x2f   :  { %s868_s20 = sld [smem:[#allocation7]] }
  0x30   :  { %s874_s0 = sld [smem:[#allocation7 + $0x9]] }
  0x31   :  { %s881_s6 = sld [smem:[#allocation7 + $0x12]] }
  0x32   :  { %s887_s26 = sld [smem:[#allocation7 + $0x6]] }
  0x33   :  { %s891_s8 = sld [smem:[#allocation7 + $0xf]] }
  0x34   :  { %s897_s28 = sld [smem:[#allocation7 + $0x18]] }
  0x35   :  { %s907_s30 = sld [smem:[#allocation7 + $0x10]] }
  0x36   :  { %s911_s13 = sld [smem:[#allocation7 + $0x8]] }
  0x37   :  { %s915_s11 = sld [smem:[#allocation7 + $0x3]] }
  0x38   :  { %s922_s12 = sld [smem:[#allocation7 + $0x15]] }
  0x39   :  { %s937_s17 = sld [smem:[#allocation7 + $0x5]] }
  0x3a   :  { %s945_s1 = sld [smem:[#allocation7 + $0xe]] }
  0x3b   :  { %s952_s23 = sld [smem:[#allocation7 + $0x16]] }
  0x83   :  { %v112_v11 = vpop.permute.xlu0 %111 }
  0x9c   :  { %v135_v12 = vpop.f32.mrf.mxu0 }
  0x9d   :  { %v711_v13 = vadd.f32 %v135_v12, %v112_v11 }
  0x9f   :  { %143 = vrot.lane.b32.xlu1 %v711_v13, %s1063_s21  ;;  %138 = vrot.lane.b32.xlu0 %v711_v13, %s1062_s22  ;;  %s794_s21 = sld [smem:[#allocation3 + $0x13]] }
  0xa0   :  { %s809_s22 = sld [smem:[#allocation3 + $0x15]] }
  0xa5   :  { %v279_v2 = vstv %s794_s21  ;;  %s854_s21 = sld [smem:[#allocation7 + $0x14]] }
  0xa6   :  { %v287_v15 = vstv %s809_s22  ;;  %s958_s22 = sld [smem:[#allocation7 + $0x17]] }
 0x111   :  { %v144_v25 = vpop.permute.xlu1 %143  ;;  %v139_v26 = vpop.permute.xlu0 %138 }
 0x112   :  { %v146_v27 = vmul.f32 %v724_v23, %v144_v25  ;;  %v141_v28 = vmul.f32 %v729_v24, %v139_v26 }
 0x114   :  { %v147_v30 = vadd.f32 %v146_v27, %v141_v28  ;;  %v295_v27 = vstv %s823_s3  ;;  %s1070_s3 = smov 2  }
 0x116   :  { %v148_v31 = vmax.f32 %v711_v13, %v147_v30 }
 0x118   :  { %v149_v33 = vrot.slane %v148_v31, 1  ;;  %v152_v34 = vrot.slane %v148_v31, 7 }
 0x11a   :  { %v150_v35 = vmul.f32 %v733_v29, %v149_v33  ;;  %v153_v36 = vmul.f32 %v152_v34, %v737_v32 }
 0x11c   :  { %v154_v37 = vadd.f32 %v153_v36, %v150_v35 }
 0x11e   :  { %v741_v38 = vmax.f32 %v148_v31, %v154_v37 }
 0x120   :  { %189 = vrot.lane.b32.xlu2 %v741_v38, %s1064_s7  ;;  %177 = vrot.lane.b32.xlu1 %v741_v38, %s1066_s25  ;;  %s796_s7 = sld [smem:[#allocation3 + $0x14]]  ;;  %v185_v56 = vrot.slane %v741_v38, 6  ;;  %v187_v57 = vrot.slane %v741_v38, 2  ;;  %v214_v37 = vmul.f32 %v213_v40, %v741_v38  ;;  %vm159_vm4 = vcmp.eq.f32.partialorder %v711_v13, %v741_v38 }
 0x121   :  { %s798_s25 = sld [smem:[#allocation3 + $0x19]] }
 0x122   :  { %v186_v8 = vmul.f32 %v717_v18, %v185_v56  ;;  %v188_v26 = vmul.f32 %v719_v19, %v187_v57  ;;  %v264_v57 = vstv %s767_s14  ;;  %s919_s14 = sld [smem:[#allocation7 + $0xc]] }
 0x124   :  { %v210_v33 = vmul.f32 %v209_v51, %v186_v8  ;;  %v249_v35 = vmul.f32 %v248_v54, %v186_v8  ;;  %v253_v54 = vmul.f32 %v252_v41, %v741_v38  ;;  %v257_v41 = vmul.f32 %v256_v55, %v188_v26 }
 0x125   :  { %v307_v55 = vstv %s816_s24  ;;  %s966_s24 = sld [smem:[#allocation7 + $0x11]] }
 0x126   :  { %v283_v7 = vstv %s796_s7  ;;  %s856_s7 = sld [smem:[#allocation7 + $0x1]] }
 0x17a   :  { %v190_v50 = vpop.permute.xlu2 %189 }
 0x17b   :  { %v831_v61 = vmul.f32 %v805_v42, %v190_v50  ;;  %v288_v50 = vmul.f32 %v287_v15, %v186_v8 }
 0x17d   :  { %v193_v14 = vrot.slane %v831_v61, 6  ;;  %v195_v36 = vrot.slane %v831_v61, 2 }
 0x192   :  { %v178_v46 = vpop.permute.xlu1 %177 }
 0x193   :  { %v180_v52 = vmul.f32 %v792_v39, %v178_v46 }
 0x195   :  { %v181_v59 = vrot.slane %v180_v52, 6  ;;  %v183_v60 = vrot.slane %v180_v52, 2  ;;  %v202_v10 = vmul.f32 %v201_v62, %v180_v52  ;;  %v241_v12 = vmul.f32 %v240_v0, %v180_v52 }
 0x196   :  { %v280_v17 = vmul.f32 %v279_v2, %v180_v52  ;;  %v194_v52 = vmul.f32 %v717_v18, %v193_v14  ;;  %v218_v62 = vmul.f32 %v217_v53, %v188_v26  ;;  %v303_v0 = vstv %s798_s25  ;;  %s901_s25 = sld [smem:[#allocation7 + $0x7]] }
 0x197   :  { %v182_v3 = vmul.f32 %v717_v18, %v181_v59  ;;  %v184_v4 = vmul.f32 %v719_v19, %v183_v60  ;;  %v292_v59 = vmul.f32 %v291_v45, %v741_v38  ;;  %v268_v53 = vstv %s769_s15  ;;  %s928_s15 = sld [smem:[#allocation7 + $0x4]] }
 0x198   :  { %v222_v45 = vmul.f32 %v221_v43, %v194_v52  ;;  %v265_v43 = vmul.f32 %v264_v57, %v831_v61  ;;  %v157_v14 = vperm.slane %v812_v47, 0  ;;  %v311_v47 = vstv %s840_s27  ;;  %s1071_s27 = smov 126  }
 0x199   :  { %v199_v9 = vmul.f32 %v198_v58, %v182_v3  ;;  %v238_v11 = vmul.f32 %v237_v63, %v182_v3  ;;  %v277_v16 = vmul.f32 %v276_v1, %v182_v3  ;;  %v206_v21 = vmul.f32 %v205_v5, %v184_v4 }
 0x19a   :  { %v245_v25 = vmul.f32 %v244_v6, %v184_v4  ;;  %v284_v30 = vmul.f32 %v283_v7, %v184_v4  ;;  %v299_v58 = vstv %s771_s16  ;;  %v196_v1 = vmul.f32 %v719_v19, %v195_v36  ;;  %s932_s16 = sld [smem:[#allocation7 + $0xd]] }
 0x19b   :  { %v203_v20 = vadd.f32 %v202_v10, %v199_v9  ;;  %v242_v22 = vadd.f32 %v241_v12, %v238_v11  ;;  %v281_v28 = vadd.f32 %v280_v17, %v277_v16  ;;  %v296_v3 = vmul.f32 %v295_v27, %v188_v26 }
 0x19c   :  { %v261_v4 = vmul.f32 %v260_v49, %v194_v52  ;;  %v300_v7 = vmul.f32 %v299_v58, %v194_v52  ;;  %v226_v9 = vmul.f32 %v225_v44, %v831_v61  ;;  %v304_v11 = vmul.f32 %v303_v0, %v831_v61 }
 0x19d   :  { %v207_v31 = vadd.f32 %v206_v21, %v203_v20  ;;  %v246_v34 = vadd.f32 %v245_v25, %v242_v22  ;;  %v285_v46 = vadd.f32 %v284_v30, %v281_v28  ;;  %v230_v15 = vmul.f32 %v229_v48, %v196_v1 }
 0x19e   :  { %v269_v16 = vmul.f32 %v268_v53, %v196_v1  ;;  %v308_v20 = vmul.f32 %v307_v55, %v196_v1  ;;  %v233_v21 = vstv %s828_s5  ;;  %v272_v22 = vstv %s836_s10  ;;  %s985_s5 = sld [smem:[#allocation7 + $0x19]] }
 0x19f   :  { %v211_v51 = vadd.f32 %v210_v33, %v207_v31  ;;  %v250_v56 = vadd.f32 %v249_v35, %v246_v34  ;;  %v289_v40 = vadd.f32 %v288_v50, %v285_v46  ;;  %v346_v27 = vstv %s848_s29  ;;  %s990_s10 = sld [smem:[#allocation7 + $0x1a]]  ;;  %s1072_s29 = smov 1  }
 0x1a0   :  { %v926_v28 = vadd.f32 %v157_v14, %v737_v32  ;;  %v349_v33 = vstv %s850_s2  ;;  %v353_v34 = vstv %s854_s21  ;;  %v331_v36 = vstv %s856_s7  ;;  %s1073_s2 = smov 127  }
 0x1a1   :  { %v215_v60 = vadd.f32 %v214_v37, %v211_v51  ;;  %v254_v63 = vadd.f32 %v253_v54, %v250_v56  ;;  %v293_v2 = vadd.f32 %v292_v59, %v289_v40  ;;  %v334_v37 = vstv %s860_s18 }
 0x1a2   :  { %v338_v46 = vstv %s862_s19  ;;  %v315_v51 = vstv %s868_s20  ;;  %v318_v56 = vstv %s874_s0  ;;  %v322_v57 = vstv %s881_s6  ;;  %s1074_s0 = sld [smem:[#allocation10_spill]] }
 0x1a3   :  { %v219_v5 = vadd.f32 %v218_v62, %v215_v60  ;;  %v258_v6 = vadd.f32 %v257_v41, %v254_v63  ;;  %v297_v8 = vadd.f32 %v296_v3, %v293_v2  ;;  %v403_v58 = vstv %s887_s26  ;;  %s1075_s26 = sld [smem:[#allocation11_spill]] }
 0x1a4   :  { %v406_v40 = vstv %s891_s8  ;;  %v410_v1 = vstv %s897_s28  ;;  %v420_v2 = vstv %s901_s25  ;;  %v363_v55 = vstv %s915_s11 }
 0x1a5   :  { %v223_v10 = vadd.f32 %v222_v45, %v219_v5  ;;  %v262_v49 = vadd.f32 %v261_v4, %v258_v6  ;;  %v301_v12 = vadd.f32 %v300_v7, %v297_v8  ;;  %v366_v7 = vstv %s919_s14 }
 0x1a6   :  { %v380_v14 = vstv %s932_s16 }
 0x1a7   :  { %v227_v44 = vadd.f32 %v226_v9, %v223_v10  ;;  %v266_v17 = vadd.f32 %v265_v43, %v262_v49  ;;  %v305_v25 = vadd.f32 %v304_v11, %v301_v12  ;;  %v370_v11 = vstv %s922_s12 }
 0x1a8   :  { %v377_v12 = vstv %s928_s15 }
 0x1a9   :  { %v231_v61 = vadd.f32 %v230_v15, %v227_v44  ;;  %v270_v26 = vadd.f32 %v269_v16, %v266_v17  ;;  %v309_v48 = vadd.f32 %v308_v20, %v305_v25  ;;  %v389_v16 = vstv %s937_s17 }
 0x1aa   :  { %v392_v44 = vstv %s945_s1  ;;  %v423_v17 = vstv %s907_s30  ;;  %v435_v20 = vstv %s911_s13 }
 0x1ab   :  { %v234_v30 = vadd.f32 %v233_v21, %v231_v61  ;;  %v273_v31 = vadd.f32 %v272_v22, %v270_v26  ;;  %v312_v35 = vadd.f32 %v311_v47, %v309_v48  ;;  %v384_v22 = vstv %s952_s23 }
 0x1ac   :  { %v396_v26 = vstv %s958_s22 }
 0x1ad   :  { %v939_v50 = vmax.f32 %v234_v30, 0.0  ;;  %v941_v52 = vmax.f32 %v273_v31, 0.0  ;;  %v947_v54 = vmax.f32 %v312_v35, 0.0 }
 0x1af   :  { %v347_v59 = vmul.f32 %v346_v27, %v939_v50  ;;  %v350_v60 = vmul.f32 %v349_v33, %v941_v52  ;;  %v332_v62 = vmul.f32 %v331_v36, %v939_v50  ;;  %v335_v63 = vmul.f32 %v334_v37, %v941_v52 }
 0x1b0   :  { %v316_v41 = vmul.f32 %v315_v51, %v939_v50  ;;  %v319_v0 = vmul.f32 %v318_v56, %v941_v52  ;;  %v354_v45 = vmul.f32 %v353_v34, %v947_v54  ;;  %v339_v5 = vmul.f32 %v338_v46, %v947_v54 }
 0x1b1   :  { %v351_v3 = vadd.f32 %v350_v60, %v347_v59  ;;  %v336_v4 = vadd.f32 %v335_v63, %v332_v62  ;;  %v323_v53 = vmul.f32 %v322_v57, %v947_v54  ;;  %v404_v43 = vmul.f32 %v403_v58, %v939_v50 }
 0x1b2   :  { %v320_v6 = vadd.f32 %v319_v0, %v316_v41  ;;  %v407_v10 = vmul.f32 %v406_v40, %v941_v52  ;;  %v364_v15 = vmul.f32 %v363_v55, %v939_v50  ;;  %v367_v21 = vmul.f32 %v366_v7, %v941_v52 }
 0x1b3   :  { %v355_v8 = vadd.f32 %v354_v45, %v351_v3  ;;  %v340_v9 = vadd.f32 %v339_v5, %v336_v4  ;;  %v378_v47 = vmul.f32 %v377_v12, %v939_v50  ;;  %v381_v61 = vmul.f32 %v380_v14, %v941_v52 }
 0x1b4   :  { %v324_v49 = vadd.f32 %v323_v53, %v320_v6  ;;  %v408_v25 = vadd.f32 %v407_v10, %v404_v43  ;;  %v368_v48 = vadd.f32 %v367_v21, %v364_v15  ;;  %v371_v27 = vmul.f32 %v370_v11, %v947_v54  ;;  %v457_v6 = vld [vmem:[%s1055_s4] sm:$0xf] }
 0x1b5   :  { %356 = vrot.lane.b32.xlu0 %v355_v8, %s1070_s3  ;;  %341 = vrot.lane.b32.xlu1 %v340_v9, %s1070_s3  ;;  %v390_v30 = vmul.f32 %v389_v16, %v939_v50  ;;  %v393_v31 = vmul.f32 %v392_v44, %v941_v52  ;;  %v411_v33 = vmul.f32 %v410_v1, %v947_v54  ;;  %v438_v34 = vstv %s966_s24 }
 0x1b6   :  { %325 = vrot.lane.b32.xlu2 %v324_v49, %s1070_s3  ;;  %v382_v35 = vadd.f32 %v381_v61, %v378_v47  ;;  %v385_v36 = vmul.f32 %v384_v22, %v947_v54  ;;  %v372_v37 = vadd.f32 %v371_v27, %v368_v48  ;;  %v397_v51 = vmul.f32 %v396_v26, %v947_v54 }
 0x1b7   :  { %v394_v46 = vadd.f32 %v393_v31, %v390_v30  ;;  %v412_v56 = vadd.f32 %v411_v33, %v408_v25  ;;  %v421_v57 = vmul.f32 %v420_v2, %v939_v50  ;;  %v424_v58 = vmul.f32 %v423_v17, %v941_v52 }
 0x1b8   :  { %v386_v40 = vadd.f32 %v385_v36, %v382_v35  ;;  %v160_v59 = vsel %vm159_vm4, %v926_v28, 4.0  ;;  %v436_v60 = vmul.f32 %v435_v20, %v939_v50  ;;  %v439_v62 = vmul.f32 %v438_v34, %v941_v52 }
 0x1b9   :  { %v398_v63 = vadd.f32 %v397_v51, %v394_v46  ;;  %v427_v41 = vstv %s985_s5  ;;  %v425_v0 = vadd.f32 %v424_v58, %v421_v57  ;;  %v442_v1 = vstv %s990_s10 }
 0x1ba   :  { %v440_v2 = vadd.f32 %v439_v62, %v436_v60  ;;  %v428_v3 = vmul.f32 %v427_v41, %v947_v54  ;;  %v443_v45 = vmul.f32 %v442_v1, %v947_v54  ;;  %v373_v49 = vrot.slane %v372_v37, 6 }
 0x1bb   :  { %v399_v14 = vrot.slane %v398_v63, 2 }
 0x1bc   :  { %v429_v4 = vadd.f32 %v428_v3, %v425_v0  ;;  %v444_v5 = vadd.f32 %v443_v45, %v440_v2  ;;  %v374_v16 = vmul.f32 %v717_v18, %v373_v49 }
 0x1bd   :  { %413 = vrot.lane.b32.xlu1 %v412_v56, %s1071_s27  ;;  %164 = vrot.lane.b32.xlu0 %v160_v59, %s1072_s29  ;;  %v400_v47 = vmul.f32 %v719_v19, %v399_v14 }
 0x1be   :  { %161 = vrot.lane.b32.xlu2 %v160_v59, %s1073_s2 }
 0x1c5   :  { %430 = vrot.lane.b32.xlu0 %v429_v4, %s1071_s27  ;;  %460 = vperm.xlu1 %564, %v457_v6  }
 0x1c6   :  { %445 = vrot.lane.b32.xlu2 %v444_v5, %s1071_s27 }
 0x210   :  { %v326_v50 = vpop.permute.xlu2 %325 }
 0x211   :  { %v327_v52 = vmul.f32 %v792_v39, %v326_v50 }
 0x213   :  { %v328_v55 = vrot.slane %v327_v52, 6 }
 0x215   :  { %v329_v43 = vmul.f32 %v717_v18, %v328_v55 }
 0x218   :  { %v162_v53 = vpop.permute.xlu2 %161 }
 0x219   :  { %v163_v21 = vmul.f32 %v729_v24, %v162_v53 }
 0x220   :  { %v446_v15 = vpop.permute.xlu2 %445 }
 0x221   :  { %v447_v61 = vmul.f32 %v805_v42, %v446_v15 }
 0x223   :  { %v448_v34 = vrot.slane %v447_v61, 2 }
 0x225   :  { %v449_v56 = vmul.f32 %v719_v19, %v448_v34 }
 0x227   :  { %v357_v7 = vpop.permute.xlu0 %356  ;;  %v342_v8 = vpop.permute.xlu1 %341 }
 0x228   :  { %v358_v54 = vmul.f32 %v792_v39, %v357_v7  ;;  %v343_v9 = vmul.f32 %v792_v39, %v342_v8 }
 0x22a   :  { %v359_v10 = vrot.slane %v358_v54, 2  ;;  %v344_v12 = vadd.f32 %v343_v9, %v329_v43 }
 0x22c   :  { %v360_v11 = vmul.f32 %v719_v19, %v359_v10 }
 0x22e   :  { %v361_v44 = vadd.f32 %v360_v11, %v344_v12 }
 0x22f   :  { %v414_v17 = vpop.permute.xlu1 %413  ;;  %v165_v20 = vpop.permute.xlu0 %164 }
 0x230   :  { %v375_v22 = vadd.f32 %v374_v16, %v361_v44  ;;  %v415_v25 = vmul.f32 %v805_v42, %v414_v17  ;;  %v166_v39 = vmul.f32 %v165_v20, %v724_v23 }
 0x232   :  { %v416_v26 = vrot.slane %v415_v25, 6  ;;  %v167_v48 = vadd.f32 %v166_v39, %v163_v21  ;;  %v387_v27 = vadd.f32 %v386_v40, %v375_v22 }
 0x234   :  { %v417_v30 = vmul.f32 %v717_v18, %v416_v26  ;;  %v168_v31 = vmin.f32 %v160_v59, %v167_v48  ;;  %v401_v33 = vadd.f32 %v400_v47, %v387_v27  ;;  %v452_v18 = vstv %s1060_s9 }
 0x236   :  { %v169_v35 = vrot.slane %v168_v31, 1  ;;  %v171_v36 = vrot.slane %v168_v31, 7  ;;  %v418_v37 = vadd.f32 %v417_v30, %v401_v33 }
 0x237   :  { %v431_v24 = vpop.permute.xlu0 %430  ;;  %v461_v19 = vpop.permute.xlu1 %460 }
 0x238   :  { %v432_v46 = vmul.f32 %v805_v42, %v431_v24  ;;  %v170_v23 = vmul.f32 %v733_v29, %v169_v35  ;;  %v172_v51 = vmul.f32 %v171_v36, %v737_v32  ;;  %v456_v29 = vld [vmem:[%s1074_s0] sm:$0xf] }
 0x23a   :  { %v433_v57 = vadd.f32 %v432_v46, %v418_v37  ;;  %v173_v58 = vadd.f32 %v172_v51, %v170_v23 }
 0x23c   :  { %v174_v40 = vmin.f32 %v168_v31, %v173_v58  ;;  %v450_v59 = vadd.f32 %v449_v56, %v433_v57 }
 0x23e   :  { %vm175_vm5 = vcmp.eq.f32.partialorder %v926_v28, %v174_v40  ;;  %v453_v60 = vadd.f32 %v452_v18, %v450_v59 }
 0x23f   :  { %vm176_vm7 = vmand %vm159_vm4, %vm175_vm5 }
 0x240   :  { %v454_v62 = vmax.f32 %v453_v60, 0.0 }
 0x242   :  { %552 = vmatpush.msk.msra.mxu1 %vm176_vm7, %v454_v62 }
 0x243   :  { %553 = vmatmul.msk.f32.vlgmr.msra.gmra.mxu1 %vm463_vm6, %v456_v29 }
 0x2c0   :  { %v484_v32 = vpop.f32.mrf.mxu1 }
 0x2c1   :  { %v485_v42 = vadd.f32 %v484_v32, %v461_v19 }
 0x2c3   :  { %487 = vst [vmem:[%s1075_s26] sm:$0xf] %v485_v42 }
 0x2c4   :  { %492 = vsyncpa [#allocation4], 1 }
 0x2c5   :  { %493 = vsyncpa [#allocation6], 1 }

</bundles_post_ra>
